<compile_context>
chip_gen: v6e
topology: v6e:2x2x1
jax: 0.10.0
libtpu: 0.0.40
codegen_flags: <defaults>
</compile_context>

<pallas_src>
import functools

import jax
import jax.numpy as jnp
from jax import lax
from jax.experimental import pallas as pl
from jax.experimental.pallas import tpu as pltpu


def cab_kernel(x_ref, w_ref, p_ref, out_ref, *, H, W):
    NB, CP, PFP = x_ref.shape
    PW = W + 2
    inv_hw = 1.0 / float(H * W)

    # Interior mask over the flattened padded spatial axis, built in-kernel from an
    # iota (no mask DMA).  The float reciprocal trick equals pos // PW exactly for
    # these small positive integers and avoids vector integer division.
    pos = lax.broadcasted_iota(jnp.int32, (1, PFP), 1)
    row = ((pos.astype(jnp.float32) + 0.5) * (1.0 / PW)).astype(jnp.int32)
    col = pos - row * PW
    inside = (row >= 1) & (row <= H) & (col >= 1) & (col <= W)

    # Packed per-channel parameters, loaded once per grid step.
    p = p_ref[...]
    b1 = p[:, 0:1]
    b2 = p[:, 1:2]
    wdc = p[:, 2:3]
    bd = p[0:1, 3:4]
    wuc = p[:, 4:5]
    buc = p[:, 5:6]

    # Hoist all 18 (CP, CP) tap weight matrices out of the per-image loop.
    wmats = [w_ref[k] for k in range(2 * 9)]

    def conv3x3_relu(base, conv_idx, bias):
        # SAME 3x3 conv as nine accumulated (CP,CP)x(CP,PFP) MXU dots.  Each tap is
        # a static lane rotation of the zero-haloed base; the circular wrap only
        # ever lands on halo/tail output columns, which are masked to zero below.
        acc = None
        for ky in range(3):
            for kx in range(3):
                d = (ky - 1) * PW + (kx - 1)
                tap = base if d == 0 else pltpu.roll(base, shift=(-d) % PFP, axis=1)
                term = jnp.dot(wmats[conv_idx * 9 + ky * 3 + kx], tap,
                               preferred_element_type=jnp.float32)
                acc = term if acc is None else acc + term
        y = jnp.maximum(acc + bias, 0.0)
        # Exact zeros on halo/tail columns: load-bearing for the next conv's SAME
        # padding and for the global-average-pool row sum.  Do not drop.
        return jnp.where(inside, y, 0.0)

    for m in range(NB):                       # static unroll over images in block
        x_m = x_ref[m]                        # (CP, PFP); zero halo/tail from wrapper
        y1 = conv3x3_relu(x_m, 0, b1)
        y2 = conv3x3_relu(y1, 1, b2)

        # Channel_Attention: GAP -> 1x1 down -> ReLU -> 1x1 up -> sigmoid.
        gp = jnp.sum(y2, axis=1, keepdims=True) * inv_hw                      # (CP, 1)
        s1 = jnp.maximum(jnp.sum(gp * wdc, axis=0, keepdims=True) + bd, 0.0)  # (1, 1)
        s2 = jax.nn.sigmoid(wuc * s1 + buc)                                   # (CP, 1)

        out_ref[m] = (y2 * s2).astype(out_ref.dtype)    # full-width aligned store


@jax.jit
def cab_forward(x_nchw, w1, b1, w2, b2, wd, bd, wu, bu):
    """CAB forward.  x_nchw: (N, C, H, W) f32; conv weights HWIO; -> (N, C, H, W)."""
    N, C, H, W = x_nchw.shape
    PH, PW = H + 2, W + 2
    PF = PH * PW
    PFP = ((PF + 127) // 128) * 128           # lane-tile-aligned flattened width
    CP = ((C + 7) // 8) * 8                   # full 8-sublane channel group

    G = 2 if N >= 2 else 1                    # >=2 grid steps -> megacore on v7x
    NB = -(-N // G)                           # images per grid step
    NP = G * NB

    # Padded-flat input: zero halo, zero channel padding, zero lane tail.
    x_pf = jnp.pad(x_nchw, ((0, NP - N), (0, CP - C), (1, 1), (1, 1)))
    x_pf = x_pf.reshape(NP, CP, PF)
    x_pf = jnp.pad(x_pf, ((0, 0), (0, 0), (0, PFP - PF)))

    # Conv weights packed as 18 (CP, CP) tap matrices: index = conv*9 + ky*3 + kx,
    # each (out_ch, in_ch), zero-padded to the 8-channel group.
    w12 = jnp.stack([w1, w2], axis=0)                         # (2,3,3,ci,co)
    wpack = jnp.transpose(w12, (0, 1, 2, 4, 3)).reshape(18, C, C)
    wpack = jnp.pad(wpack, ((0, 0), (0, CP - C), (0, CP - C)))

    # Biases / Channel_Attention params packed into one tiny (CP, 8) array:
    # columns = [b1, b2, wd, bd, wu, bu, 0, 0].
    ppack = jnp.zeros((CP, 8), jnp.float32)
    ppack = ppack.at[:C, 0].set(b1).at[:C, 1].set(b2).at[:C, 2].set(wd)
    ppack = ppack.at[0, 3].set(bd)
    ppack = ppack.at[:C, 4].set(wu).at[:C, 5].set(bu)

    kernel = functools.partial(cab_kernel, H=H, W=W)

    out_pf = pl.pallas_call(
        kernel,
        out_shape=jax.ShapeDtypeStruct((NP, CP, PFP), jnp.float32),
        grid_spec=pltpu.PrefetchScalarGridSpec(
            num_scalar_prefetch=0,
            grid=(G,),
            in_specs=[
                pl.BlockSpec((NB, CP, PFP), lambda g: (g, 0, 0)),   # image block
                pl.BlockSpec((18, CP, CP), lambda g: (0, 0, 0)),    # conv tap weights
                pl.BlockSpec((CP, 8), lambda g: (0, 0)),            # packed params
            ],
            out_specs=pl.BlockSpec((NB, CP, PFP), lambda g: (g, 0, 0)),
        ),
        compiler_params=pltpu.CompilerParams(
            dimension_semantics=("parallel",)),                     # megacore on v7x
    )(x_pf, wpack, ppack)

    # Strip channel padding, lane tail and halo: -> (N, C, H, W).
    out = out_pf[:N, :C, :PF].reshape(N, C, PH, PW)
    return out[:, :, 1:H + 1, 1:W + 1]


def cab_reference(x_nchw, w1, b1, w2, b2, wd, bd, wu, bu):
    """Pure-JAX reference (same math as the PyTorch module), for verification."""
    x = jnp.transpose(x_nchw, (0, 2, 3, 1))
    dn = ("NHWC", "HWIO", "NHWC")
    out1 = jax.nn.relu(
        lax.conv_general_dilated(x, w1, (1, 1), "SAME", dimension_numbers=dn) + b1)
    out2 = jax.nn.relu(
        lax.conv_general_dilated(out1, w2, (1, 1), "SAME", dimension_numbers=dn) + b2)
    gp = jnp.mean(out2, axis=(1, 2), keepdims=True)                          # (N,1,1,C)
    s1 = jax.nn.relu(
        jnp.sum(gp * wd[None, None, None, :], axis=-1, keepdims=True) + bd)
    s2 = jax.nn.sigmoid(wu[None, None, None, :] * s1 + bu[None, None, None, :])
    out = out2 * s2
    return jnp.transpose(out, (0, 3, 1, 2))


if __name__ == "__main__":
    N, C, H, W = 2, 4, 16, 16

    key = jax.random.PRNGKey(0)
    keys = jax.random.split(key, 9)

    x = jax.random.normal(keys[0], (N, C, H, W), jnp.float32)

    # Deterministic synthetic parameters (shapes follow CAB.__init__ with ch=C).
    w1 = jax.random.normal(keys[1], (3, 3, C, C), jnp.float32) * 0.1   # conv1 (HWIO)
    b1 = jax.random.normal(keys[2], (C,), jnp.float32) * 0.1
    w2 = jax.random.normal(keys[3], (3, 3, C, C), jnp.float32) * 0.1   # conv2 (HWIO)
    b2 = jax.random.normal(keys[4], (C,), jnp.float32) * 0.1
    wd = jax.random.normal(keys[5], (C,), jnp.float32) * 0.1           # CA_down (ch->1)
    bd = jax.random.normal(keys[6], (), jnp.float32) * 0.1
    wu = jax.random.normal(keys[7], (C,), jnp.float32) * 0.1           # CA_up   (1->ch)
    bu = jax.random.normal(keys[8], (C,), jnp.float32) * 0.1

    # TODO(synk): CAB.conv3 (ch*2 -> 1) is defined in __init__ but never used in
    # forward(), so it is intentionally not implemented.

    out = cab_forward(x, w1, b1, w2, b2, wd, bd, wu, bu)
    out = jax.block_until_ready(out)

    ref = cab_reference(x, w1, b1, w2, b2, wd, bd, wu, bu)
    assert out.shape == (N, C, H, W)
    assert jnp.allclose(out, ref, rtol=1e-4, atol=1e-4), (
        float(jnp.max(jnp.abs(out - ref))))

    print("KERNEL_OK")
</pallas_src>

<mosaic_0001>
module attributes {stable_mosaic.version = 11 : i64} {
  func.func @cab_kernel(%arg0: i32, %arg1: memref<1x8x384xf32, #tpu.memory_space<vmem>>, %arg2: memref<18x8x8xf32, #tpu.memory_space<vmem>>, %arg3: memref<8x8xf32, #tpu.memory_space<vmem>>, %arg4: memref<1x8x384xf32, #tpu.memory_space<vmem>>) attributes {dimension_semantics = [#tpu.dimension_semantics<parallel>], iteration_bounds = array<i64: 2>, scalar_prefetch = 0 : i64, scratch_operands = 0 : i64, tpu.core_type = #tpu.core_type<tc>, window_params = [{transform_indices = @transform_0, window_bounds = array<i64: 1, 8, 384>}, {pipeline_mode = #tpu.pipeline_mode<synchronous>, transform_indices = @transform_1, window_bounds = array<i64: 18, 8, 8>}, {pipeline_mode = #tpu.pipeline_mode<synchronous>, transform_indices = @transform_2, window_bounds = array<i64: 8, 8>}, {transform_indices = @transform_3, window_bounds = array<i64: 1, 8, 384>}]} {
    %0 = tpu.iota {dimensions = array<i32: 1>} : vector<1x384xi32>
    %1 = arith.sitofp %0 : vector<1x384xi32> to vector<1x384xf32>
    %cst = arith.constant 5.000000e-01 : f32
    %2 = vector.broadcast %cst : f32 to vector<1x384xf32>
    %3 = arith.addf %1, %2 : vector<1x384xf32>
    %cst_0 = arith.constant 0.055555556 : f32
    %4 = vector.broadcast %cst_0 : f32 to vector<1x384xf32>
    %5 = arith.mulf %3, %4 : vector<1x384xf32>
    %6 = arith.fptosi %5 : vector<1x384xf32> to vector<1x384xi32>
    %c18_i32 = arith.constant 18 : i32
    %7 = vector.broadcast %c18_i32 : i32 to vector<1x384xi32>
    %8 = arith.muli %6, %7 : vector<1x384xi32>
    %9 = arith.subi %0, %8 : vector<1x384xi32>
    %c1_i32 = arith.constant 1 : i32
    %10 = vector.broadcast %c1_i32 : i32 to vector<1x384xi32>
    %11 = arith.cmpi sge, %6, %10 : vector<1x384xi32>
    %c16_i32 = arith.constant 16 : i32
    %12 = vector.broadcast %c16_i32 : i32 to vector<1x384xi32>
    %13 = arith.cmpi sle, %6, %12 : vector<1x384xi32>
    %14 = arith.andi %11, %13 : vector<1x384xi1>
    %c1_i32_1 = arith.constant 1 : i32
    %15 = vector.broadcast %c1_i32_1 : i32 to vector<1x384xi32>
    %16 = arith.cmpi sge, %9, %15 : vector<1x384xi32>
    %17 = arith.andi %14, %16 : vector<1x384xi1>
    %c16_i32_2 = arith.constant 16 : i32
    %18 = vector.broadcast %c16_i32_2 : i32 to vector<1x384xi32>
    %19 = arith.cmpi sle, %9, %18 : vector<1x384xi32>
    %20 = arith.andi %17, %19 : vector<1x384xi1>
    %c0 = arith.constant 0 : index
    %c0_3 = arith.constant 0 : index
    %21 = vector.load %arg3[%c0, %c0_3] : memref<8x8xf32, #tpu.memory_space<vmem>>, vector<8x8xf32>
    %22 = vector.extract_strided_slice %21 {offsets = [0, 0], sizes = [8, 1], strides = [1, 1]} : vector<8x8xf32> to vector<8x1xf32>
    %23 = vector.extract_strided_slice %21 {offsets = [0, 1], sizes = [8, 1], strides = [1, 1]} : vector<8x8xf32> to vector<8x1xf32>
    %24 = vector.extract_strided_slice %21 {offsets = [0, 2], sizes = [8, 1], strides = [1, 1]} : vector<8x8xf32> to vector<8x1xf32>
    %25 = vector.extract_strided_slice %21 {offsets = [0, 3], sizes = [1, 1], strides = [1, 1]} : vector<8x8xf32> to vector<1x1xf32>
    %26 = vector.extract_strided_slice %21 {offsets = [0, 4], sizes = [8, 1], strides = [1, 1]} : vector<8x8xf32> to vector<8x1xf32>
    %27 = vector.extract_strided_slice %21 {offsets = [0, 5], sizes = [8, 1], strides = [1, 1]} : vector<8x8xf32> to vector<8x1xf32>
    %c0_4 = arith.constant 0 : index
    %c0_5 = arith.constant 0 : index
    %c0_6 = arith.constant 0 : index
    %28 = vector.load %arg2[%c0_4, %c0_5, %c0_6] : memref<18x8x8xf32, #tpu.memory_space<vmem>>, vector<1x8x8xf32>
    %29 = vector.shape_cast %28 : vector<1x8x8xf32> to vector<8x8xf32>
    %c1 = arith.constant 1 : index
    %c0_7 = arith.constant 0 : index
    %c0_8 = arith.constant 0 : index
    %30 = vector.load %arg2[%c1, %c0_7, %c0_8] : memref<18x8x8xf32, #tpu.memory_space<vmem>>, vector<1x8x8xf32>
    %31 = vector.shape_cast %30 : vector<1x8x8xf32> to vector<8x8xf32>
    %c2 = arith.constant 2 : index
    %c0_9 = arith.constant 0 : index
    %c0_10 = arith.constant 0 : index
    %32 = vector.load %arg2[%c2, %c0_9, %c0_10] : memref<18x8x8xf32, #tpu.memory_space<vmem>>, vector<1x8x8xf32>
    %33 = vector.shape_cast %32 : vector<1x8x8xf32> to vector<8x8xf32>
    %c3 = arith.constant 3 : index
    %c0_11 = arith.constant 0 : index
    %c0_12 = arith.constant 0 : index
    %34 = vector.load %arg2[%c3, %c0_11, %c0_12] : memref<18x8x8xf32, #tpu.memory_space<vmem>>, vector<1x8x8xf32>
    %35 = vector.shape_cast %34 : vector<1x8x8xf32> to vector<8x8xf32>
    %c4 = arith.constant 4 : index
    %c0_13 = arith.constant 0 : index
    %c0_14 = arith.constant 0 : index
    %36 = vector.load %arg2[%c4, %c0_13, %c0_14] : memref<18x8x8xf32, #tpu.memory_space<vmem>>, vector<1x8x8xf32>
    %37 = vector.shape_cast %36 : vector<1x8x8xf32> to vector<8x8xf32>
    %c5 = arith.constant 5 : index
    %c0_15 = arith.constant 0 : index
    %c0_16 = arith.constant 0 : index
    %38 = vector.load %arg2[%c5, %c0_15, %c0_16] : memref<18x8x8xf32, #tpu.memory_space<vmem>>, vector<1x8x8xf32>
    %39 = vector.shape_cast %38 : vector<1x8x8xf32> to vector<8x8xf32>
    %c6 = arith.constant 6 : index
    %c0_17 = arith.constant 0 : index
    %c0_18 = arith.constant 0 : index
    %40 = vector.load %arg2[%c6, %c0_17, %c0_18] : memref<18x8x8xf32, #tpu.memory_space<vmem>>, vector<1x8x8xf32>
    %41 = vector.shape_cast %40 : vector<1x8x8xf32> to vector<8x8xf32>
    %c7 = arith.constant 7 : index
    %c0_19 = arith.constant 0 : index
    %c0_20 = arith.constant 0 : index
    %42 = vector.load %arg2[%c7, %c0_19, %c0_20] : memref<18x8x8xf32, #tpu.memory_space<vmem>>, vector<1x8x8xf32>
    %43 = vector.shape_cast %42 : vector<1x8x8xf32> to vector<8x8xf32>
    %c8 = arith.constant 8 : index
    %c0_21 = arith.constant 0 : index
    %c0_22 = arith.constant 0 : index
    %44 = vector.load %arg2[%c8, %c0_21, %c0_22] : memref<18x8x8xf32, #tpu.memory_space<vmem>>, vector<1x8x8xf32>
    %45 = vector.shape_cast %44 : vector<1x8x8xf32> to vector<8x8xf32>
    %c9 = arith.constant 9 : index
    %c0_23 = arith.constant 0 : index
    %c0_24 = arith.constant 0 : index
    %46 = vector.load %arg2[%c9, %c0_23, %c0_24] : memref<18x8x8xf32, #tpu.memory_space<vmem>>, vector<1x8x8xf32>
    %47 = vector.shape_cast %46 : vector<1x8x8xf32> to vector<8x8xf32>
    %c10 = arith.constant 10 : index
    %c0_25 = arith.constant 0 : index
    %c0_26 = arith.constant 0 : index
    %48 = vector.load %arg2[%c10, %c0_25, %c0_26] : memref<18x8x8xf32, #tpu.memory_space<vmem>>, vector<1x8x8xf32>
    %49 = vector.shape_cast %48 : vector<1x8x8xf32> to vector<8x8xf32>
    %c11 = arith.constant 11 : index
    %c0_27 = arith.constant 0 : index
    %c0_28 = arith.constant 0 : index
    %50 = vector.load %arg2[%c11, %c0_27, %c0_28] : memref<18x8x8xf32, #tpu.memory_space<vmem>>, vector<1x8x8xf32>
    %51 = vector.shape_cast %50 : vector<1x8x8xf32> to vector<8x8xf32>
    %c12 = arith.constant 12 : index
    %c0_29 = arith.constant 0 : index
    %c0_30 = arith.constant 0 : index
    %52 = vector.load %arg2[%c12, %c0_29, %c0_30] : memref<18x8x8xf32, #tpu.memory_space<vmem>>, vector<1x8x8xf32>
    %53 = vector.shape_cast %52 : vector<1x8x8xf32> to vector<8x8xf32>
    %c13 = arith.constant 13 : index
    %c0_31 = arith.constant 0 : index
    %c0_32 = arith.constant 0 : index
    %54 = vector.load %arg2[%c13, %c0_31, %c0_32] : memref<18x8x8xf32, #tpu.memory_space<vmem>>, vector<1x8x8xf32>
    %55 = vector.shape_cast %54 : vector<1x8x8xf32> to vector<8x8xf32>
    %c14 = arith.constant 14 : index
    %c0_33 = arith.constant 0 : index
    %c0_34 = arith.constant 0 : index
    %56 = vector.load %arg2[%c14, %c0_33, %c0_34] : memref<18x8x8xf32, #tpu.memory_space<vmem>>, vector<1x8x8xf32>
    %57 = vector.shape_cast %56 : vector<1x8x8xf32> to vector<8x8xf32>
    %c15 = arith.constant 15 : index
    %c0_35 = arith.constant 0 : index
    %c0_36 = arith.constant 0 : index
    %58 = vector.load %arg2[%c15, %c0_35, %c0_36] : memref<18x8x8xf32, #tpu.memory_space<vmem>>, vector<1x8x8xf32>
    %59 = vector.shape_cast %58 : vector<1x8x8xf32> to vector<8x8xf32>
    %c16 = arith.constant 16 : index
    %c0_37 = arith.constant 0 : index
    %c0_38 = arith.constant 0 : index
    %60 = vector.load %arg2[%c16, %c0_37, %c0_38] : memref<18x8x8xf32, #tpu.memory_space<vmem>>, vector<1x8x8xf32>
    %61 = vector.shape_cast %60 : vector<1x8x8xf32> to vector<8x8xf32>
    %c17 = arith.constant 17 : index
    %c0_39 = arith.constant 0 : index
    %c0_40 = arith.constant 0 : index
    %62 = vector.load %arg2[%c17, %c0_39, %c0_40] : memref<18x8x8xf32, #tpu.memory_space<vmem>>, vector<1x8x8xf32>
    %63 = vector.shape_cast %62 : vector<1x8x8xf32> to vector<8x8xf32>
    %c0_41 = arith.constant 0 : index
    %c0_42 = arith.constant 0 : index
    %c0_43 = arith.constant 0 : index
    %64 = vector.load %arg1[%c0_41, %c0_42, %c0_43] : memref<1x8x384xf32, #tpu.memory_space<vmem>>, vector<1x8x384xf32>
    %65 = vector.shape_cast %64 : vector<1x8x384xf32> to vector<8x384xf32>
    %c19_i32 = arith.constant 19 : i32
    %66 = tpu.dynamic_rotate %65 by %c19_i32 dim 1 : vector<8x384xf32>, i32 -> vector<8x384xf32>
    %cst_44 = arith.constant dense<0.000000e+00> : vector<8x384xf32>
    %67 = tpu.matmul %29, %66, %cst_44 {dimension_numbers = #tpu.dot_dimension_numbers<[1], [0], [0], [1], [0, 0, 1, 1], [], []>} : vector<8x8xf32>, vector<8x384xf32>, vector<8x384xf32> -> vector<8x384xf32>
    %c18_i32_45 = arith.constant 18 : i32
    %68 = tpu.dynamic_rotate %65 by %c18_i32_45 dim 1 : vector<8x384xf32>, i32 -> vector<8x384xf32>
    %cst_46 = arith.constant dense<0.000000e+00> : vector<8x384xf32>
    %69 = tpu.matmul %31, %68, %cst_46 {dimension_numbers = #tpu.dot_dimension_numbers<[1], [0], [0], [1], [0, 0, 1, 1], [], []>} : vector<8x8xf32>, vector<8x384xf32>, vector<8x384xf32> -> vector<8x384xf32>
    %70 = arith.addf %67, %69 : vector<8x384xf32>
    %c17_i32 = arith.constant 17 : i32
    %71 = tpu.dynamic_rotate %65 by %c17_i32 dim 1 : vector<8x384xf32>, i32 -> vector<8x384xf32>
    %cst_47 = arith.constant dense<0.000000e+00> : vector<8x384xf32>
    %72 = tpu.matmul %33, %71, %cst_47 {dimension_numbers = #tpu.dot_dimension_numbers<[1], [0], [0], [1], [0, 0, 1, 1], [], []>} : vector<8x8xf32>, vector<8x384xf32>, vector<8x384xf32> -> vector<8x384xf32>
    %73 = arith.addf %70, %72 : vector<8x384xf32>
    %c1_i32_48 = arith.constant 1 : i32
    %74 = tpu.dynamic_rotate %65 by %c1_i32_48 dim 1 : vector<8x384xf32>, i32 -> vector<8x384xf32>
    %cst_49 = arith.constant dense<0.000000e+00> : vector<8x384xf32>
    %75 = tpu.matmul %35, %74, %cst_49 {dimension_numbers = #tpu.dot_dimension_numbers<[1], [0], [0], [1], [0, 0, 1, 1], [], []>} : vector<8x8xf32>, vector<8x384xf32>, vector<8x384xf32> -> vector<8x384xf32>
    %76 = arith.addf %73, %75 : vector<8x384xf32>
    %cst_50 = arith.constant dense<0.000000e+00> : vector<8x384xf32>
    %77 = tpu.matmul %37, %65, %cst_50 {dimension_numbers = #tpu.dot_dimension_numbers<[1], [0], [0], [1], [0, 0, 1, 1], [], []>} : vector<8x8xf32>, vector<8x384xf32>, vector<8x384xf32> -> vector<8x384xf32>
    %78 = arith.addf %76, %77 : vector<8x384xf32>
    %c383_i32 = arith.constant 383 : i32
    %79 = tpu.dynamic_rotate %65 by %c383_i32 dim 1 : vector<8x384xf32>, i32 -> vector<8x384xf32>
    %cst_51 = arith.constant dense<0.000000e+00> : vector<8x384xf32>
    %80 = tpu.matmul %39, %79, %cst_51 {dimension_numbers = #tpu.dot_dimension_numbers<[1], [0], [0], [1], [0, 0, 1, 1], [], []>} : vector<8x8xf32>, vector<8x384xf32>, vector<8x384xf32> -> vector<8x384xf32>
    %81 = arith.addf %78, %80 : vector<8x384xf32>
    %c367_i32 = arith.constant 367 : i32
    %82 = tpu.dynamic_rotate %65 by %c367_i32 dim 1 : vector<8x384xf32>, i32 -> vector<8x384xf32>
    %cst_52 = arith.constant dense<0.000000e+00> : vector<8x384xf32>
    %83 = tpu.matmul %41, %82, %cst_52 {dimension_numbers = #tpu.dot_dimension_numbers<[1], [0], [0], [1], [0, 0, 1, 1], [], []>} : vector<8x8xf32>, vector<8x384xf32>, vector<8x384xf32> -> vector<8x384xf32>
    %84 = arith.addf %81, %83 : vector<8x384xf32>
    %c366_i32 = arith.constant 366 : i32
    %85 = tpu.dynamic_rotate %65 by %c366_i32 dim 1 : vector<8x384xf32>, i32 -> vector<8x384xf32>
    %cst_53 = arith.constant dense<0.000000e+00> : vector<8x384xf32>
    %86 = tpu.matmul %43, %85, %cst_53 {dimension_numbers = #tpu.dot_dimension_numbers<[1], [0], [0], [1], [0, 0, 1, 1], [], []>} : vector<8x8xf32>, vector<8x384xf32>, vector<8x384xf32> -> vector<8x384xf32>
    %87 = arith.addf %84, %86 : vector<8x384xf32>
    %c365_i32 = arith.constant 365 : i32
    %88 = tpu.dynamic_rotate %65 by %c365_i32 dim 1 : vector<8x384xf32>, i32 -> vector<8x384xf32>
    %cst_54 = arith.constant dense<0.000000e+00> : vector<8x384xf32>
    %89 = tpu.matmul %45, %88, %cst_54 {dimension_numbers = #tpu.dot_dimension_numbers<[1], [0], [0], [1], [0, 0, 1, 1], [], []>} : vector<8x8xf32>, vector<8x384xf32>, vector<8x384xf32> -> vector<8x384xf32>
    %90 = arith.addf %87, %89 : vector<8x384xf32>
    %91 = vector.broadcast %22 : vector<8x1xf32> to vector<8x384xf32>
    %92 = arith.addf %90, %91 : vector<8x384xf32>
    %cst_55 = arith.constant 0.000000e+00 : f32
    %93 = vector.broadcast %cst_55 : f32 to vector<8x384xf32>
    %94 = arith.maximumf %92, %93 : vector<8x384xf32>
    %cst_56 = arith.constant 0.000000e+00 : f32
    %95 = vector.shape_cast %20 : vector<1x384xi1> to vector<1x384xi1>
    %96 = vector.broadcast %95 : vector<1x384xi1> to vector<8x384xi1>
    %97 = vector.broadcast %cst_56 : f32 to vector<8x384xf32>
    %98 = arith.select %96, %94, %97 : vector<8x384xi1>, vector<8x384xf32>
    %c19_i32_57 = arith.constant 19 : i32
    %99 = tpu.dynamic_rotate %98 by %c19_i32_57 dim 1 : vector<8x384xf32>, i32 -> vector<8x384xf32>
    %cst_58 = arith.constant dense<0.000000e+00> : vector<8x384xf32>
    %100 = tpu.matmul %47, %99, %cst_58 {dimension_numbers = #tpu.dot_dimension_numbers<[1], [0], [0], [1], [0, 0, 1, 1], [], []>} : vector<8x8xf32>, vector<8x384xf32>, vector<8x384xf32> -> vector<8x384xf32>
    %c18_i32_59 = arith.constant 18 : i32
    %101 = tpu.dynamic_rotate %98 by %c18_i32_59 dim 1 : vector<8x384xf32>, i32 -> vector<8x384xf32>
    %cst_60 = arith.constant dense<0.000000e+00> : vector<8x384xf32>
    %102 = tpu.matmul %49, %101, %cst_60 {dimension_numbers = #tpu.dot_dimension_numbers<[1], [0], [0], [1], [0, 0, 1, 1], [], []>} : vector<8x8xf32>, vector<8x384xf32>, vector<8x384xf32> -> vector<8x384xf32>
    %103 = arith.addf %100, %102 : vector<8x384xf32>
    %c17_i32_61 = arith.constant 17 : i32
    %104 = tpu.dynamic_rotate %98 by %c17_i32_61 dim 1 : vector<8x384xf32>, i32 -> vector<8x384xf32>
    %cst_62 = arith.constant dense<0.000000e+00> : vector<8x384xf32>
    %105 = tpu.matmul %51, %104, %cst_62 {dimension_numbers = #tpu.dot_dimension_numbers<[1], [0], [0], [1], [0, 0, 1, 1], [], []>} : vector<8x8xf32>, vector<8x384xf32>, vector<8x384xf32> -> vector<8x384xf32>
    %106 = arith.addf %103, %105 : vector<8x384xf32>
    %c1_i32_63 = arith.constant 1 : i32
    %107 = tpu.dynamic_rotate %98 by %c1_i32_63 dim 1 : vector<8x384xf32>, i32 -> vector<8x384xf32>
    %cst_64 = arith.constant dense<0.000000e+00> : vector<8x384xf32>
    %108 = tpu.matmul %53, %107, %cst_64 {dimension_numbers = #tpu.dot_dimension_numbers<[1], [0], [0], [1], [0, 0, 1, 1], [], []>} : vector<8x8xf32>, vector<8x384xf32>, vector<8x384xf32> -> vector<8x384xf32>
    %109 = arith.addf %106, %108 : vector<8x384xf32>
    %cst_65 = arith.constant dense<0.000000e+00> : vector<8x384xf32>
    %110 = tpu.matmul %55, %98, %cst_65 {dimension_numbers = #tpu.dot_dimension_numbers<[1], [0], [0], [1], [0, 0, 1, 1], [], []>} : vector<8x8xf32>, vector<8x384xf32>, vector<8x384xf32> -> vector<8x384xf32>
    %111 = arith.addf %109, %110 : vector<8x384xf32>
    %c383_i32_66 = arith.constant 383 : i32
    %112 = tpu.dynamic_rotate %98 by %c383_i32_66 dim 1 : vector<8x384xf32>, i32 -> vector<8x384xf32>
    %cst_67 = arith.constant dense<0.000000e+00> : vector<8x384xf32>
    %113 = tpu.matmul %57, %112, %cst_67 {dimension_numbers = #tpu.dot_dimension_numbers<[1], [0], [0], [1], [0, 0, 1, 1], [], []>} : vector<8x8xf32>, vector<8x384xf32>, vector<8x384xf32> -> vector<8x384xf32>
    %114 = arith.addf %111, %113 : vector<8x384xf32>
    %c367_i32_68 = arith.constant 367 : i32
    %115 = tpu.dynamic_rotate %98 by %c367_i32_68 dim 1 : vector<8x384xf32>, i32 -> vector<8x384xf32>
    %cst_69 = arith.constant dense<0.000000e+00> : vector<8x384xf32>
    %116 = tpu.matmul %59, %115, %cst_69 {dimension_numbers = #tpu.dot_dimension_numbers<[1], [0], [0], [1], [0, 0, 1, 1], [], []>} : vector<8x8xf32>, vector<8x384xf32>, vector<8x384xf32> -> vector<8x384xf32>
    %117 = arith.addf %114, %116 : vector<8x384xf32>
    %c366_i32_70 = arith.constant 366 : i32
    %118 = tpu.dynamic_rotate %98 by %c366_i32_70 dim 1 : vector<8x384xf32>, i32 -> vector<8x384xf32>
    %cst_71 = arith.constant dense<0.000000e+00> : vector<8x384xf32>
    %119 = tpu.matmul %61, %118, %cst_71 {dimension_numbers = #tpu.dot_dimension_numbers<[1], [0], [0], [1], [0, 0, 1, 1], [], []>} : vector<8x8xf32>, vector<8x384xf32>, vector<8x384xf32> -> vector<8x384xf32>
    %120 = arith.addf %117, %119 : vector<8x384xf32>
    %c365_i32_72 = arith.constant 365 : i32
    %121 = tpu.dynamic_rotate %98 by %c365_i32_72 dim 1 : vector<8x384xf32>, i32 -> vector<8x384xf32>
    %cst_73 = arith.constant dense<0.000000e+00> : vector<8x384xf32>
    %122 = tpu.matmul %63, %121, %cst_73 {dimension_numbers = #tpu.dot_dimension_numbers<[1], [0], [0], [1], [0, 0, 1, 1], [], []>} : vector<8x8xf32>, vector<8x384xf32>, vector<8x384xf32> -> vector<8x384xf32>
    %123 = arith.addf %120, %122 : vector<8x384xf32>
    %124 = vector.broadcast %23 : vector<8x1xf32> to vector<8x384xf32>
    %125 = arith.addf %123, %124 : vector<8x384xf32>
    %cst_74 = arith.constant 0.000000e+00 : f32
    %126 = vector.broadcast %cst_74 : f32 to vector<8x384xf32>
    %127 = arith.maximumf %125, %126 : vector<8x384xf32>
    %cst_75 = arith.constant 0.000000e+00 : f32
    %128 = vector.shape_cast %20 : vector<1x384xi1> to vector<1x384xi1>
    %129 = vector.broadcast %128 : vector<1x384xi1> to vector<8x384xi1>
    %130 = vector.broadcast %cst_75 : f32 to vector<8x384xf32>
    %131 = arith.select %129, %127, %130 : vector<8x384xi1>, vector<8x384xf32>
    %cst_76 = arith.constant dense<0.000000e+00> : vector<8xf32>
    %132 = vector.multi_reduction <add>, %131, %cst_76 [1] : vector<8x384xf32> to vector<8xf32>
    %133 = vector.shape_cast %132 : vector<8xf32> to vector<8x1xf32>
    %cst_77 = arith.constant 3.906250e-03 : f32
    %134 = vector.broadcast %cst_77 : f32 to vector<8x1xf32>
    %135 = arith.mulf %133, %134 : vector<8x1xf32>
    %136 = arith.mulf %135, %24 : vector<8x1xf32>
    %cst_78 = arith.constant dense<0.000000e+00> : vector<1xf32>
    %137 = vector.multi_reduction <add>, %136, %cst_78 [0] : vector<8x1xf32> to vector<1xf32>
    %138 = vector.shape_cast %137 : vector<1xf32> to vector<1x1xf32>
    %139 = arith.addf %138, %25 : vector<1x1xf32>
    %cst_79 = arith.constant 0.000000e+00 : f32
    %140 = vector.broadcast %cst_79 : f32 to vector<1x1xf32>
    %141 = arith.maximumf %139, %140 : vector<1x1xf32>
    %142 = vector.broadcast %141 : vector<1x1xf32> to vector<8x1xf32>
    %143 = arith.mulf %26, %142 : vector<8x1xf32>
    %144 = arith.addf %143, %27 : vector<8x1xf32>
    %145 = arith.negf %144 : vector<8x1xf32>
    %146 = math.exp %145 : vector<8x1xf32>
    %cst_80 = arith.constant 1.000000e+00 : f32
    %147 = vector.broadcast %cst_80 : f32 to vector<8x1xf32>
    %148 = arith.addf %147, %146 : vector<8x1xf32>
    %149 = arith.divf %147, %148 : vector<8x1xf32>
    %150 = vector.broadcast %149 : vector<8x1xf32> to vector<8x384xf32>
    %151 = arith.mulf %131, %150 : vector<8x384xf32>
    %c0_81 = arith.constant 0 : index
    %c0_82 = arith.constant 0 : index
    %c0_83 = arith.constant 0 : index
    %152 = vector.load %arg4[%c0_81, %c0_82, %c0_83] : memref<1x8x384xf32, #tpu.memory_space<vmem>>, vector<1x8x384xf32>
    %153 = vector.shape_cast %152 : vector<1x8x384xf32> to vector<8x384xf32>
    %154 = vector.shape_cast %151 : vector<8x384xf32> to vector<1x8x384xf32>
    tpu.vector_store %arg4[%c0_81, %c0_82, %c0_83], %154 {strides = array<i32>} : memref<1x8x384xf32, #tpu.memory_space<vmem>>, vector<1x8x384xf32>,
    return
  }
  func.func @transform_0(%arg0: i32) -> (i32, i32, i32) {
    %c0_i32 = arith.constant 0 : i32
    %c0_i32_0 = arith.constant 0 : i32
    %c0_i32_1 = arith.constant 0 : i32
    return %arg0, %c0_i32, %c0_i32_0 : i32, i32, i32
  }
  func.func @transform_1(%arg0: i32) -> (i32, i32, i32) {
    %c0_i32 = arith.constant 0 : i32
    %c0_i32_0 = arith.constant 0 : i32
    %c0_i32_1 = arith.constant 0 : i32
    %c0_i32_2 = arith.constant 0 : i32
    return %c0_i32, %c0_i32_0, %c0_i32_1 : i32, i32, i32
  }
  func.func @transform_2(%arg0: i32) -> (i32, i32) {
    %c0_i32 = arith.constant 0 : i32
    %c0_i32_0 = arith.constant 0 : i32
    %c0_i32_1 = arith.constant 0 : i32
    return %c0_i32, %c0_i32_0 : i32, i32
  }
  func.func @transform_3(%arg0: i32) -> (i32, i32, i32) {
    %c0_i32 = arith.constant 0 : i32
    %c0_i32_0 = arith.constant 0 : i32
    %c0_i32_1 = arith.constant 0 : i32
    return %arg0, %c0_i32, %c0_i32_0 : i32, i32, i32
  }
}

</mosaic_0001>

<bundles_post_ra>
// kernel: cab_forward.1
= control target key start
LH: loop header
LB: loop body
LE: loop exit
PB: predicated region body
PF: predicated region fallthrough
CT: control target
= control target key end

     0   :  { %s3444_s12 = smov 0   ;;  %s3889_s0 = inlined_call_operand.vmem [shape: f32[2,8,384], index: 0, kind: input, shape index: {}]   ;;  %s3890_s1 = inlined_call_operand.vmem [shape: f32[18,8,8], index: 1, kind: input, shape index: {}]   ;;  %s3891_s2 = inlined_call_operand.vmem [shape: f32[8,8], index: 2, kind: input, shape index: {}]   ;;  %s3892_s3 = inlined_call_operand.vmem [shape: f32[2,8,384], index: 3, kind: output, shape index: {}]  }
   0x1 LB: > { %s3174_s13 = sadd.s32 4294967295, %s3408_s12   ;;  %p3178_p0 = scmp.ge.s32.totalorder %s3408_s12, 1  ;;  %s3408_s12 = sphi %s3444_s12, %s13_s12  }
   0x2   : > { %p137_p1 = scmp.lt.s32.totalorder %s3408_s12, 3 }
   0x4   : > { %p138_p2 = pnand %p3178_p0, %p137_p1 }
   0x5   : > { %p161_p3 = scmp.lt.s32.totalorder (!%p138_p2), %s3174_s13, 1  ;;  %s3412_s18 = smov (!%p138_p2), 18  }
   0x6   : > { %141 = sbr.rel (%p138_p2) target bundleno = 1188 (0x4a4), region = 32  ;;  %s3413_s19 = smov (!%p138_p2), 19  }
   0x7   : > { %s3414_s20 = smov (!%p138_p2), 17   ;;  %s3415_s21 = smov (!%p138_p2), 1  }
   0x8   : > { %s3416_s22 = smov (!%p138_p2), 127   ;;  %s3417_s23 = smov (!%p138_p2), 111  }
   0x9   : > { %s3419_s24 = smov (!%p138_p2), 110   ;;  %s3420_s25 = smov (!%p138_p2), 109  }
   0xa   : > { %s3422_s16 = smov (!%p138_p2), 2  }
   0xb   : > { %v3410_v0 = vmov 0.0   ;;  %s3920_s13 = smov (!%p161_p3, %s3174_s13), 1  ;;  %vm3411_vm0 = vmmov 0   ;;  %v3418_v4 = vmov 0   ;;  %v3521_v5 = vld [vmem:[%s3891_s2] sm:$0xff]  ;;  %v171_v6 = vlaneseq  ;;  %v3181_v14 = vld [vmem:[%s3890_s1 + $0x8] sm:$0xff] }
   0xc   : > { %3276 = vmatprep.subr.mxu1 %v3410_v0  ;;  %341 = vmatprep.mubr.f32.mxu0 %v3410_v0  ;;  %s3366_s14 = smul.u32 24, %s3920_s13  ;;  %vm273_vm2 = vcmask 64512   ;;  %v215_v21 = vld [vmem:[%s3890_s1] sm:$0xff]  ;;  %v3182_v27 = vld [vmem:[%s3890_s1 + $0x10] sm:$0xff]  ;;  %v3183_v32 = vld [vmem:[%s3890_s1 + $0x18] sm:$0xff] }
   0xd   : > { %3278 = vmatprep.mubr.msk.f32.mxu1 %vm3411_vm0, %v3410_v0  ;;  %3395 = vset.pattern.permute.xlu0 %v3418_v4  ;;  %v3525_v7 = vand.u32 127, %v171_v6  ;;  %v3184_v39 = vld [vmem:[%s3890_s1 + $0x20] sm:$0xff]  ;;  %v3185_v44 = vld [vmem:[%s3890_s1 + $0x28] sm:$0xff]  ;;  %v3186_v50 = vld [vmem:[%s3890_s1 + $0x30] sm:$0xff] }
   0xe   : > { %s165_s17 = scalar_lea.vmem %s3889_s0, %s3366_s14  ;;  %v3187_v56 = vld [vmem:[%s3890_s1 + $0x38] sm:$0xff]  ;;  %v3188_v61 = vld [vmem:[%s3890_s1 + $0x40] sm:$0xff]  ;;  %s170_s27 = scalar_lea.vmem %s3892_s3, %s3366_s14 }
   0xf   : > { %v3464_v1 = vld [vmem:[%s165_s17 + $0x10] sm:$0xff]  ;;  %v3466_v2 = vld [vmem:[%s165_s17] sm:$0xff]  ;;  %v3472_v3 = vld [vmem:[%s165_s17 + $0x8] sm:$0xff]  ;;  %vm269_vm1 = vcmp.lt.s32.totalorder %v3525_v7, 18  ;;  %vm259_vm3 = vcmp.lt.s32.totalorder %v3525_v7, 19  ;;  %vm568_vm4 = vcmp.lt.s32.totalorder %v3525_v7, 17 }
  0x10   : > { %267 = vrot.lane.b32.xlu1 %v3464_v1, %s3412_s18  ;;  %263 = vrot.lane.b32.xlu0 %v3466_v2, %s3412_s18  ;;  %vm3897_vm5 = vcmp.lt.s32.totalorder %v3525_v7, 1  ;;  %vm3896_vm6 = vcmp.lt.s32.totalorder %v3525_v7, 127  ;;  %vm3895_vm7 = vcmp.lt.s32.totalorder %v3525_v7, 111  ;;  %vm3894_vm8 = vcmp.lt.s32.totalorder %v3525_v7, 110 }
  0x11   : > { %vm3893_vm9 = vcmp.lt.s32.totalorder %v3525_v7, 109 }
  0x14   : > { %253 = vrot.lane.b32.xlu1 %v3466_v2, %s3413_s19  ;;  %265 = vrot.lane.b32.xlu0 %v3472_v3, %s3412_s18 }
  0x18   : > { %257 = vrot.lane.b32.xlu1 %v3464_v1, %s3413_s19  ;;  %255 = vrot.lane.b32.xlu0 %v3472_v3, %s3413_s19 }
  0x1c   : > { %564 = vrot.lane.b32.xlu1 %v3472_v3, %s3414_s20  ;;  %562 = vrot.lane.b32.xlu0 %v3466_v2, %s3414_s20 }
  0x20   : > { %719 = vrot.lane.b32.xlu1 %v3466_v2, %s3415_s21  ;;  %566 = vrot.lane.b32.xlu0 %v3464_v1, %s3414_s20 }
  0x24   : > { %723 = vrot.lane.b32.xlu1 %v3464_v1, %s3415_s21  ;;  %721 = vrot.lane.b32.xlu0 %v3472_v3, %s3415_s21 }
  0x28   : > { %1027 = vrot.lane.b32.xlu1 %v3464_v1, %s3416_s22  ;;  %1025 = vrot.lane.b32.xlu0 %v3472_v3, %s3416_s22 }
  0x2c   : > { %1182 = vrot.lane.b32.xlu1 %v3472_v3, %s3417_s23  ;;  %1023 = vrot.lane.b32.xlu0 %v3466_v2, %s3416_s22 }
  0x30   : > { %1180 = vrot.lane.b32.xlu1 %v3466_v2, %s3417_s23  ;;  %1184 = vrot.lane.b32.xlu0 %v3464_v1, %s3417_s23 }
  0x34   : > { %1341 = vrot.lane.b32.xlu1 %v3464_v1, %s3419_s24  ;;  %1339 = vrot.lane.b32.xlu0 %v3472_v3, %s3419_s24 }
  0x38   : > { %1496 = vrot.lane.b32.xlu1 %v3472_v3, %s3420_s25  ;;  %1337 = vrot.lane.b32.xlu0 %v3466_v2, %s3419_s24 }
  0x3c   : > { %1494 = vrot.lane.b32.xlu1 %v3466_v2, %s3420_s25  ;;  %1498 = vrot.lane.b32.xlu0 %v3464_v1, %s3420_s25 }
  0x40   : > { %1653 = vperm.xlu0 %3395, %v3521_v5  }
  0x82   : > { %v268_v8 = vpop.permute.xlu1 %267  ;;  %v264_v9 = vpop.permute.xlu0 %263 }
  0x83   : > { %v272_v15 = vsel %vm269_vm1, %v268_v8, %v264_v9 }
  0x86   : > { %v254_v10 = vpop.permute.xlu1 %253  ;;  %v266_v11 = vpop.permute.xlu0 %265 }
  0x87   : > { %v271_v12 = vsel %vm269_vm1, %v264_v9, %v266_v11  ;;  %v270_v13 = vsel %vm269_vm1, %v266_v11, %v268_v8  ;;  %v174_v11 = vadd.s32 256, %v3525_v7 }
  0x88   : > { %307 = vmatprep.subr.mxu0 %v271_v12  ;;  %3277 = vmatpush3.msra.mxu1 %v270_v13 }
  0x89   : > { %308 = vmatpush1.msra.mxu0 %v272_v15  ;;  %3281 = vmatprep.subr.mxu1 %v3410_v0 }
  0x8a   : > { %v258_v16 = vpop.permute.xlu1 %257  ;;  %v256_v17 = vpop.permute.xlu0 %255  ;;  %3279 = vmatmul.mubr.msk.f32.vlgmr.msra.gmra.mxu1 %vm273_vm2, %v3181_v14  ;;  %3198 = vmatmul.mubr.msk.f32.vlgmr.msra.gmra.mxu0 %vm273_vm2, %v3181_v14  ;;  %v177_v14 = vcvt.s32.f32 %v174_v11 }
  0x8b   : > { %v262_v18 = vsel %vm259_vm3, %v258_v16, %v254_v10  ;;  %v260_v19 = vsel %vm259_vm3, %v256_v17, %v258_v16  ;;  %v261_v20 = vsel %vm259_vm3, %v254_v10, %v256_v17  ;;  %485 = vmatprep.mubr.f32.mxu0 %v3410_v0  ;;  %3283 = vmatprep.mubr.msk.f32.mxu1 %vm3411_vm0, %v3410_v0 }
  0x8c   : > { %451 = vmatprep.subr.mxu0 %v261_v20  ;;  %3282 = vmatpush3.msra.mxu1 %v260_v19  ;;  %v175_v19 = vcvt.s32.f32 %v3525_v7  ;;  %v180_v20 = vadd.f32 0.5, %v177_v14 }
  0x8d   : > { %452 = vmatpush1.msra.mxu0 %v262_v18  ;;  %3286 = vmatprep.subr.mxu1 %v3410_v0 }
  0x8e   : > { %v565_v22 = vpop.permute.xlu1 %564  ;;  %v563_v23 = vpop.permute.xlu0 %562  ;;  %3200 = vmatmul.mubr.msk.f32.vlgmr.msra.gmra.mxu0 %vm273_vm2, %v215_v21  ;;  %3284 = vmatmul.mubr.msk.f32.vlgmr.msra.gmra.mxu1 %vm273_vm2, %v215_v21 }
  0x8f   : > { %v570_v24 = vsel %vm568_vm4, %v563_v23, %v565_v22  ;;  %639 = vmatprep.mubr.f32.mxu0 %v3410_v0  ;;  %3288 = vmatprep.mubr.msk.f32.mxu1 %vm3411_vm0, %v3410_v0 }
  0x90   : > { %605 = vmatprep.subr.mxu0 %v570_v24  ;;  %v178_v24 = vadd.f32 0.5, %v175_v19 }
  0x92   : > { %v720_v25 = vpop.permute.xlu1 %719  ;;  %v567_v26 = vpop.permute.xlu0 %566 }
  0x93   : > { %v569_v28 = vsel %vm568_vm4, %v565_v22, %v567_v26  ;;  %v571_v29 = vsel %vm568_vm4, %v567_v26, %v563_v23  ;;  %v3670_v26 = vadd.s32 128, %v3525_v7 }
  0x94   : > { %606 = vmatpush1.msra.mxu0 %v571_v29  ;;  %3287 = vmatpush3.msra.mxu1 %v569_v28 }
  0x95   : > { %3202 = vmatmul.mubr.msk.f32.vlgmr.msra.gmra.mxu0 %vm273_vm2, %v3182_v27  ;;  %3289 = vmatmul.mubr.msk.f32.vlgmr.msra.gmra.mxu1 %vm273_vm2, %v3182_v27 }
  0x96   : > { %v724_v30 = vpop.permute.xlu1 %723  ;;  %v722_v31 = vpop.permute.xlu0 %721  ;;  %3291 = vmatprep.subr.mxu1 %v3410_v0  ;;  %3293 = vmatprep.mubr.msk.f32.mxu1 %vm3411_vm0, %v3410_v0 }
  0x97   : > { %v728_v33 = vsel %vm3897_vm5, %v724_v30, %v720_v25  ;;  %v726_v34 = vsel %vm3897_vm5, %v722_v31, %v724_v30  ;;  %v727_v35 = vsel %vm3897_vm5, %v720_v25, %v722_v31  ;;  %796 = vmatprep.mubr.f32.mxu0 %v3410_v0  ;;  %v183_v25 = vmul.f32 0.055555556, %v180_v20 }
  0x98   : > { %762 = vmatprep.subr.mxu0 %v727_v35  ;;  %3292 = vmatpush3.msra.mxu1 %v726_v34  ;;  %v181_v30 = vmul.f32 0.055555556, %v178_v24 }
  0x99   : > { %763 = vmatpush1.msra.mxu0 %v728_v33  ;;  %3294 = vmatmul.mubr.msk.f32.vlgmr.msra.gmra.mxu1 %vm273_vm2, %v3183_v32  ;;  %v3371_v31 = vtrunc.f32 %v183_v25 }
  0x9a   : > { %v1028_v36 = vpop.permute.xlu1 %1027  ;;  %3204 = vmatmul.mubr.msk.f32.vlgmr.msra.gmra.mxu0 %vm273_vm2, %v3183_v32  ;;  %909 = vmatprep.subr.mxu0 %v3472_v3  ;;  %v1026_v37 = vpop.permute.xlu0 %1025  ;;  %v176_v32 = vcvt.s32.f32 %v3670_v26 }
  0x9b   : > { %910 = vmatpush1.msra.mxu0 %v3466_v2  ;;  %3296 = vmatprep.subr.mxu1 %v3410_v0  ;;  %v1030_v38 = vsel %vm3896_vm6, %v1026_v37, %v1028_v36 }
  0x9c   : > { %3297 = vmatpush3.msra.mxu1 %v3464_v1  ;;  %3298 = vmatprep.mubr.msk.f32.mxu1 %vm3411_vm0, %v3410_v0 }
  0x9d   : > { %1066 = vmatprep.subr.mxu0 %v1030_v38  ;;  %943 = vmatprep.mubr.f32.mxu0 %v3410_v0  ;;  %v3367_v38 = vtrunc.f32 %v181_v30 }
  0x9e   : > { %3299 = vmatmul.mubr.msk.f32.vlgmr.msra.gmra.mxu1 %vm273_vm2, %v3184_v39  ;;  %v1183_v40 = vpop.permute.xlu1 %1182  ;;  %3206 = vmatmul.mubr.msk.f32.vlgmr.msra.gmra.mxu0 %vm273_vm2, %v3184_v39  ;;  %v1024_v41 = vpop.permute.xlu0 %1023  ;;  %v3372_v39 = vcvt.f32.s32 %v3371_v31 }
  0x9f   : > { %v1031_v42 = vsel %vm3896_vm6, %v1024_v41, %v1026_v37  ;;  %v1032_v43 = vsel %vm3896_vm6, %v1028_v36, %v1024_v41  ;;  %3301 = vmatprep.subr.mxu1 %v3410_v0  ;;  %3303 = vmatprep.mubr.msk.f32.mxu1 %vm3411_vm0, %v3410_v0 }
  0xa0   : > { %1067 = vmatpush1.msra.mxu0 %v1031_v42  ;;  %3302 = vmatpush3.msra.mxu1 %v1032_v43  ;;  %vm195_vm10 = vcmp.ge.s32.totalorder %v3372_v39, 1  ;;  %vm198_vm11 = vcmp.le.s32.totalorder %v3372_v39, 16 }
  0xa1   : > { %1100 = vmatprep.mubr.f32.mxu0 %v3410_v0  ;;  %3306 = vmatprep.subr.mxu1 %v3410_v0  ;;  %vm201_vm12 = vmand %vm195_vm10, %vm198_vm11 }
  0xa2   : > { %3304 = vmatmul.mubr.msk.f32.vlgmr.msra.gmra.mxu1 %vm273_vm2, %v3185_v44  ;;  %v1181_v45 = vpop.permute.xlu1 %1180  ;;  %3208 = vmatmul.mubr.msk.f32.vlgmr.msra.gmra.mxu0 %vm273_vm2, %v3185_v44  ;;  %v1185_v46 = vpop.permute.xlu0 %1184 }
  0xa3   : > { %v1188_v47 = vsel %vm3895_vm7, %v1181_v45, %v1183_v40  ;;  %v1189_v48 = vsel %vm3895_vm7, %v1185_v46, %v1181_v45  ;;  %v1187_v49 = vsel %vm3895_vm7, %v1183_v40, %v1185_v46  ;;  %3308 = vmatprep.mubr.msk.f32.mxu1 %vm3411_vm0, %v3410_v0  ;;  %1257 = vmatprep.mubr.f32.mxu0 %v3410_v0  ;;  %v179_v40 = vadd.f32 0.5, %v176_v32 }
  0xa4   : > { %1223 = vmatprep.subr.mxu0 %v1187_v49  ;;  %3307 = vmatpush3.msra.mxu1 %v1189_v48  ;;  %v3368_v48 = vcvt.f32.s32 %v3367_v38  ;;  %v189_v49 = vmul.u32 18, %v3372_v39  ;;  %v3093_v39 = vshrl.u32 %v171_v6, 7 }
  0xa5   : > { %1224 = vmatpush1.msra.mxu0 %v1188_v47  ;;  %3311 = vmatprep.subr.mxu1 %v3410_v0 }
  0xa6   : > { %3309 = vmatmul.mubr.msk.f32.vlgmr.msra.gmra.mxu1 %vm273_vm2, %v3186_v50  ;;  %v1342_v51 = vpop.permute.xlu1 %1341  ;;  %3210 = vmatmul.mubr.msk.f32.vlgmr.msra.gmra.mxu0 %vm273_vm2, %v3186_v50  ;;  %v1340_v52 = vpop.permute.xlu0 %1339  ;;  %v182_v50 = vmul.f32 0.055555556, %v179_v40  ;;  %vm193_vm14 = vcmp.ge.s32.totalorder %v3368_v48, 1  ;;  %vm196_vm15 = vcmp.le.s32.totalorder %v3368_v48, 16 }
  0xa7   : > { %v1344_v53 = vsel %vm3894_vm8, %v1340_v52, %v1342_v51  ;;  %1414 = vmatprep.mubr.f32.mxu0 %v3410_v0  ;;  %3313 = vmatprep.mubr.msk.f32.mxu1 %vm3411_vm0, %v3410_v0  ;;  %vm199_vm7 = vmand %vm193_vm14, %vm196_vm15  ;;  %vm3907_vm15 = vcmp.lt.s32.totalorder %v3525_v7, 127 }
  0xa8   : > { %1380 = vmatprep.subr.mxu0 %v1344_v53 }
  0xaa   : > { %v1497_v54 = vpop.permute.xlu1 %1496  ;;  %v1338_v55 = vpop.permute.xlu0 %1337 }
  0xab   : > { %v1345_v57 = vsel %vm3894_vm8, %v1338_v55, %v1340_v52  ;;  %v1346_v58 = vsel %vm3894_vm8, %v1342_v51, %v1338_v55 }
  0xac   : > { %1381 = vmatpush1.msra.mxu0 %v1345_v57  ;;  %3312 = vmatpush3.msra.mxu1 %v1346_v58  ;;  %v187_v58 = vmul.u32 18, %v3368_v48 }
  0xad   : > { %3212 = vmatmul.mubr.msk.f32.vlgmr.msra.gmra.mxu0 %vm273_vm2, %v3187_v56  ;;  %3314 = vmatmul.mubr.msk.f32.vlgmr.msra.gmra.mxu1 %vm273_vm2, %v3187_v56 }
  0xae   : > { %v1495_v59 = vpop.permute.xlu1 %1494  ;;  %v1499_v60 = vpop.permute.xlu0 %1498  ;;  %3316 = vmatprep.subr.mxu1 %v3410_v0  ;;  %3318 = vmatprep.mubr.msk.f32.mxu1 %vm3411_vm0, %v3410_v0 }
  0xaf   : > { %v1502_v62 = vsel %vm3893_vm9, %v1495_v59, %v1497_v54  ;;  %v1503_v63 = vsel %vm3893_vm9, %v1499_v60, %v1495_v59  ;;  %v1501_v1 = vsel %vm3893_vm9, %v1497_v54, %v1499_v60  ;;  %1571 = vmatprep.mubr.f32.mxu0 %v3410_v0  ;;  %v192_v59 = vsub.s32 %v174_v11, %v189_v49 }
  0xb0   : > { %1537 = vmatprep.subr.mxu0 %v1501_v1  ;;  %3317 = vmatpush3.msra.mxu1 %v1503_v63  ;;  %v3369_v60 = vtrunc.f32 %v182_v50  ;;  %v3190_v50 = vld [vmem:[%s3890_s1 + $0x50] sm:$0xff] }
  0xb1   : > { %1538 = vmatpush1.msra.mxu0 %v1502_v62  ;;  %3319 = vmatmul.mubr.msk.f32.vlgmr.msra.gmra.mxu1 %vm273_vm2, %v3188_v61  ;;  %vm204_vm13 = vcmp.ge.s32.totalorder %v192_v59, 1  ;;  %vm210_vm8 = vcmp.le.s32.totalorder %v192_v59, 16 }
  0xb2   : > { %3214 = vmatmul.mubr.msk.f32.vlgmr.msra.gmra.mxu0 %vm273_vm2, %v3188_v61  ;;  %3321 = vmatprep.subr.mxu1 %v3410_v0  ;;  %vm207_vm9 = vmand %vm201_vm12, %vm204_vm13 }
  0xb3   : > { %3323 = vmatprep.mubr.msk.f32.mxu1 %vm3411_vm0, %v3410_v0  ;;  %1756 = vmatprep.mubr.f32.mxu0 %v3410_v0  ;;  %vm3676_vm10 = vmand %vm207_vm9, %vm210_vm8 }
 0x14a   : > { %v343_v2 = vpop.f32.mrf.mxu0  ;;  %v414_v3 = vpop.f32.mrf.mxu1 }
 0x14c   : > { %v345_v4 = vpop.f32.mrf.mxu0  ;;  %v3280_v8 = vpop.f32.mrf.mxu1 }
 0x14e   : > { %v487_v9 = vpop.f32.mrf.mxu0  ;;  %v558_v10 = vpop.f32.mrf.mxu1 }
 0x14f   : > { %v488_v35 = vadd.f32 %v487_v9, %v343_v2  ;;  %v559_v41 = vadd.f32 %v558_v10, %v414_v3 }
 0x150   : > { %v3285_v12 = vpop.f32.mrf.mxu1  ;;  %v489_v13 = vpop.f32.mrf.mxu0 }
 0x151   : > { %v490_v51 = vadd.f32 %v489_v13, %v345_v4  ;;  %v190_v12 = vsub.s32 %v3525_v7, %v187_v58  ;;  %v3370_v13 = vcvt.f32.s32 %v3369_v60  ;;  %v3189_v58 = vld [vmem:[%s3890_s1 + $0x48] sm:$0xff] }
 0x153   : > { %vm202_vm6 = vcmp.ge.s32.totalorder %v190_v12, 1  ;;  %vm208_vm5 = vcmp.le.s32.totalorder %v190_v12, 16  ;;  %vm194_vm12 = vcmp.ge.s32.totalorder %v3370_v13, 1  ;;  %vm197_vm8 = vcmp.le.s32.totalorder %v3370_v13, 16 }
 0x154   : > { %vm205_vm11 = vmand %vm199_vm7, %vm202_vm6 }
 0x155   : > { %v641_v15 = vpop.f32.mrf.mxu0  ;;  %v712_v16 = vpop.f32.mrf.mxu1  ;;  %vm3689_vm9 = vmand %vm205_vm11, %vm208_vm5 }
 0x156   : > { %v716_v44 = vadd.f32 %v641_v15, %v488_v35  ;;  %v718_v45 = vadd.f32 %v712_v16, %v559_v41  ;;  %vm200_vm6 = vmand %vm194_vm12, %vm197_vm8  ;;  %v3421_v41 = vmov 1   ;;  %vm3910_vm8 = vcmp.lt.s32.totalorder %v3525_v7, 111 }
 0x157   : > { %v643_v17 = vpop.f32.mrf.mxu0  ;;  %v3290_v18 = vpop.f32.mrf.mxu1  ;;  %3396 = vset.pattern.permute.xlu0 %v3421_v41  ;;  %vm3908_vm11 = vmmov %vm3907_vm15 }
 0x158   : > { %v717_v61 = vadd.f32 %v643_v17, %v490_v51  ;;  %v1654_v17 = vpop.permute.xlu0 %1653  ;;  %vm3909_vm12 = vmmov %vm3908_vm11 }
 0x159   : > { %v869_v21 = vpop.f32.mrf.mxu1 }
 0x15a   : > { %v798_v22 = vpop.f32.mrf.mxu0  ;;  %v875_v52 = vadd.f32 %v869_v21, %v718_v45 }
 0x15b   : > { %v3295_v23 = vpop.f32.mrf.mxu1  ;;  %v873_v54 = vadd.f32 %v798_v22, %v716_v44 }
 0x15c   : > { %v800_v27 = vpop.f32.mrf.mxu0  ;;  %v188_v23 = vmul.u32 18, %v3370_v13 }
 0x15d   : > { %v874_v3 = vadd.f32 %v800_v27, %v717_v61  ;;  %v3094_v27 = vsub.s32 0, %v3093_v39 }
 0x15e   : > { %v1016_v28 = vpop.f32.mrf.mxu1  ;;  %v945_v29 = vpop.f32.mrf.mxu0  ;;  %v191_v32 = vsub.s32 %v3670_v26, %v188_v23 }
 0x15f   : > { %v1022_v55 = vadd.f32 %v1016_v28, %v875_v52  ;;  %v1020_v56 = vadd.f32 %v945_v29, %v873_v54 }
 0x160   : > { %v3300_v33 = vpop.f32.mrf.mxu1  ;;  %v947_v34 = vpop.f32.mrf.mxu0  ;;  %vm203_vm7 = vcmp.ge.s32.totalorder %v191_v32, 1  ;;  %vm209_vm13 = vcmp.le.s32.totalorder %v191_v32, 16  ;;  %v3196_v32 = vld [vmem:[%s3890_s1 + $0x80] sm:$0xff] }
 0x161   : > { %v1021_v14 = vadd.f32 %v947_v34, %v874_v3  ;;  %vm206_vm5 = vmand %vm200_vm6, %vm203_vm7 }
 0x162   : > { %v1173_v36 = vpop.f32.mrf.mxu1  ;;  %v1102_v37 = vpop.f32.mrf.mxu0  ;;  %vm3704_vm14 = vmand %vm206_vm5, %vm209_vm13  ;;  %vm3913_vm5 = vcmp.lt.s32.totalorder %v3525_v7, 110 }
 0x163   : > { %v1179_v62 = vadd.f32 %v1173_v36, %v1022_v55  ;;  %v1177_v63 = vadd.f32 %v1102_v37, %v1020_v56  ;;  %vm3911_vm6 = vmmov %vm3910_vm8 }
 0x164   : > { %v3305_v42 = vpop.f32.mrf.mxu1  ;;  %v1104_v43 = vpop.f32.mrf.mxu0  ;;  %vm3912_vm7 = vmmov %vm3911_vm6 }
 0x165   : > { %v1178_v18 = vadd.f32 %v1104_v43, %v1021_v14  ;;  %vm3914_vm13 = vmmov %vm3913_vm5 }
 0x166   : > { %v1330_v46 = vpop.f32.mrf.mxu1  ;;  %v1259_v47 = vpop.f32.mrf.mxu0 }
 0x167   : > { %v1336_v8 = vadd.f32 %v1330_v46, %v1179_v62  ;;  %v1334_v9 = vadd.f32 %v1259_v47, %v1177_v63  ;;  %v3191_v62 = vld [vmem:[%s3890_s1 + $0x58] sm:$0xff] }
 0x168   : > { %v3310_v53 = vpop.f32.mrf.mxu1  ;;  %v1261_v57 = vpop.f32.mrf.mxu0 }
 0x169   : > { %v1335_v24 = vadd.f32 %v1261_v57, %v1178_v18 }
 0x16d   : > { %v1416_v1 = vpop.f32.mrf.mxu0  ;;  %v1487_v2 = vpop.f32.mrf.mxu1 }
 0x16e   : > { %v1493_v11 = vadd.f32 %v1487_v2, %v1336_v8  ;;  %v1491_v15 = vadd.f32 %v1416_v1, %v1334_v9 }
 0x16f   : > { %v1418_v4 = vpop.f32.mrf.mxu0  ;;  %v3315_v10 = vpop.f32.mrf.mxu1 }
 0x170   : > { %v1492_v30 = vadd.f32 %v1418_v4, %v1335_v24  ;;  %v3192_v4 = vld [vmem:[%s3890_s1 + $0x60] sm:$0xff] }
 0x171   : > { %v1644_v16 = vpop.f32.mrf.mxu1 }
 0x172   : > { %v1650_v19 = vadd.f32 %v1644_v16, %v1493_v11  ;;  %v1573_v20 = vpop.f32.mrf.mxu0 }
 0x173   : > { %v1648_v21 = vadd.f32 %v1573_v20, %v1491_v15  ;;  %v3320_v22 = vpop.f32.mrf.mxu1  ;;  %v3193_v15 = vld [vmem:[%s3890_s1 + $0x68] sm:$0xff]  ;;  %v3194_v20 = vld [vmem:[%s3890_s1 + $0x70] sm:$0xff] }
 0x174   : > { %v3674_v25 = vadd.f32 %v1654_v17, %v1650_v19  ;;  %v1575_v29 = vpop.f32.mrf.mxu0 }
 0x175   : > { %v3680_v28 = vadd.f32 %v1654_v17, %v1648_v21  ;;  %v1649_v35 = vadd.f32 %v1575_v29, %v1492_v30 }
 0x176   : > { %v1661_v31 = vmax.f32 %v3674_v25, 0.0  ;;  %v3195_v25 = vld [vmem:[%s3890_s1 + $0x78] sm:$0xff] }
 0x177   : > { %v1659_v33 = vmax.f32 %v3680_v28, 0.0  ;;  %v3699_v37 = vadd.f32 %v1654_v17, %v1649_v35 }
 0x178   : > { %v1670_v34 = vsel %vm3676_vm10, %v1661_v31, 0.0 }
 0x179   : > { %1675 = vrot.lane.b32.xlu1 %v1670_v34, %s3413_s19  ;;  %1684 = vrot.lane.b32.xlu0 %v1670_v34, %s3412_s18  ;;  %v1668_v26 = vsel %vm3689_vm9, %v1659_v33, 0.0  ;;  %v1660_v38 = vmax.f32 %v3699_v37, 0.0 }
 0x17b   : > { %v1669_v40 = vsel %vm3704_vm14, %v1660_v38, 0.0 }
 0x17d   : > { %1981 = vrot.lane.b32.xlu0 %v1670_v34, %s3414_s20  ;;  %1680 = vrot.lane.b32.xlu1 %v1668_v26, %s3412_s18 }
 0x181   : > { %1977 = vrot.lane.b32.xlu0 %v1668_v26, %s3414_s20  ;;  %1671 = vrot.lane.b32.xlu1 %v1668_v26, %s3413_s19 }
 0x185   : > { %1673 = vrot.lane.b32.xlu0 %v1669_v40, %s3413_s19  ;;  %1682 = vrot.lane.b32.xlu1 %v1669_v40, %s3412_s18 }
 0x189   : > { %2436 = vrot.lane.b32.xlu0 %v1668_v26, %s3416_s22  ;;  %2133 = vrot.lane.b32.xlu1 %v1668_v26, %s3415_s21 }
 0x18d   : > { %2135 = vrot.lane.b32.xlu0 %v1669_v40, %s3415_s21  ;;  %1979 = vrot.lane.b32.xlu1 %v1669_v40, %s3414_s20 }
 0x191   : > { %2596 = vrot.lane.b32.xlu0 %v1670_v34, %s3417_s23  ;;  %2137 = vrot.lane.b32.xlu1 %v1670_v34, %s3415_s21 }
 0x195   : > { %2438 = vrot.lane.b32.xlu0 %v1669_v40, %s3416_s22  ;;  %2440 = vrot.lane.b32.xlu1 %v1670_v34, %s3416_s22 }
 0x199   : > { %2748 = vrot.lane.b32.xlu0 %v1668_v26, %s3419_s24  ;;  %2592 = vrot.lane.b32.xlu1 %v1668_v26, %s3417_s23 }
 0x19d   : > { %2750 = vrot.lane.b32.xlu0 %v1669_v40, %s3419_s24  ;;  %2594 = vrot.lane.b32.xlu1 %v1669_v40, %s3417_s23 }
 0x1a1   : > { %2908 = vrot.lane.b32.xlu0 %v1670_v34, %s3420_s25  ;;  %2752 = vrot.lane.b32.xlu1 %v1670_v34, %s3419_s24 }
 0x1a5   : > { %2906 = vrot.lane.b32.xlu1 %v1669_v40, %s3420_s25  ;;  %3061 = vperm.xlu0 %3396, %v3521_v5  }
 0x1a9   : > { %2904 = vrot.lane.b32.xlu1 %v1668_v26, %s3420_s25  ;;  %3087 = vrot.lane.b32.xlu0 %v3521_v5, %s3416_s22 }
 0x1eb   : > { %v1676_v42 = vpop.permute.xlu1 %1675  ;;  %v1685_v43 = vpop.permute.xlu0 %1684 }
 0x1ef   : > { %v1982_v44 = vpop.permute.xlu0 %1981  ;;  %v1681_v45 = vpop.permute.xlu1 %1680 }
 0x1f0   : > { %v1688_v53 = vsel %vm269_vm1, %v1685_v43, %v1681_v45 }
 0x1f3   : > { %v1978_v46 = vpop.permute.xlu0 %1977  ;;  %v1672_v47 = vpop.permute.xlu1 %1671 }
 0x1f4   : > { %v1679_v59 = vsel %vm259_vm3, %v1676_v42, %v1672_v47  ;;  %v1985_v2 = vsel %vm568_vm4, %v1982_v44, %v1978_v46 }
 0x1f7   : > { %v1674_v48 = vpop.permute.xlu0 %1673  ;;  %v1683_v49 = vpop.permute.xlu1 %1682 }
 0x1f8   : > { %v1686_v51 = vsel %vm269_vm1, %v1683_v49, %v1685_v43  ;;  %v1687_v52 = vsel %vm269_vm1, %v1681_v45, %v1683_v49  ;;  %v1677_v54 = vsel %vm259_vm3, %v1674_v48, %v1676_v42  ;;  %v1678_v56 = vsel %vm259_vm3, %v1672_v47, %v1674_v48 }
 0x1f9   : > { %1722 = vmatprep.subr.mxu0 %v1687_v52  ;;  %3322 = vmatpush3.msra.mxu1 %v1686_v51  ;;  %vm3904_vm1 = vcmp.lt.s32.totalorder %v3525_v7, 1 }
 0x1fa   : > { %1723 = vmatpush1.msra.mxu0 %v1688_v53  ;;  %3324 = vmatmul.mubr.msk.f32.vlgmr.msra.gmra.mxu1 %vm273_vm2, %v3190_v50  ;;  %vm3905_vm3 = vmmov %vm3904_vm1 }
 0x1fb   : > { %3326 = vmatprep.subr.mxu1 %v3410_v0  ;;  %v2437_v55 = vpop.permute.xlu0 %2436  ;;  %3216 = vmatmul.mubr.msk.f32.vlgmr.msra.gmra.mxu0 %vm273_vm2, %v3190_v50  ;;  %v2134_v57 = vpop.permute.xlu1 %2133 }
 0x1fc   : > { %1866 = vmatprep.subr.mxu0 %v1678_v56  ;;  %3327 = vmatpush3.msra.mxu1 %v1677_v54 }
 0x1fd   : > { %1867 = vmatpush1.msra.mxu0 %v1679_v59  ;;  %3328 = vmatprep.mubr.msk.f32.mxu1 %vm3411_vm0, %v3410_v0 }
 0x1fe   : > { %1900 = vmatprep.mubr.f32.mxu0 %v3410_v0  ;;  %3329 = vmatmul.mubr.msk.f32.vlgmr.msra.gmra.mxu1 %vm273_vm2, %v3189_v58 }
 0x1ff   : > { %v2136_v60 = vpop.permute.xlu0 %2135  ;;  %3218 = vmatmul.mubr.msk.f32.vlgmr.msra.gmra.mxu0 %vm273_vm2, %v3189_v58  ;;  %v1980_v61 = vpop.permute.xlu1 %1979  ;;  %3331 = vmatprep.subr.mxu1 %v3410_v0 }
 0x200   : > { %v1983_v63 = vsel %vm568_vm4, %v1980_v61, %v1982_v44  ;;  %v1984_v1 = vsel %vm568_vm4, %v1978_v46, %v1980_v61  ;;  %3333 = vmatprep.mubr.msk.f32.mxu1 %vm3411_vm0, %v3410_v0  ;;  %2053 = vmatprep.mubr.f32.mxu0 %v3410_v0  ;;  %v2140_v3 = vsel %vm3904_vm1, %v2134_v57, %v2136_v60  ;;  %vm3906_vm4 = vmmov %vm3904_vm1 }
 0x201   : > { %2019 = vmatprep.subr.mxu0 %v1984_v1  ;;  %3332 = vmatpush3.msra.mxu1 %v1983_v63  ;;  %vm3915_vm1 = vmmov %vm3913_vm5 }
 0x202   : > { %2020 = vmatpush1.msra.mxu0 %v1985_v2  ;;  %3334 = vmatmul.mubr.msk.f32.vlgmr.msra.gmra.mxu1 %vm273_vm2, %v3191_v62 }
 0x203   : > { %v2597_v8 = vpop.permute.xlu0 %2596  ;;  %3220 = vmatmul.mubr.msk.f32.vlgmr.msra.gmra.mxu0 %vm273_vm2, %v3191_v62  ;;  %2175 = vmatprep.subr.mxu0 %v2140_v3  ;;  %v2138_v9 = vpop.permute.xlu1 %2137 }
 0x204   : > { %v2139_v10 = vsel %vm3905_vm3, %v2136_v60, %v2138_v9  ;;  %v2141_v12 = vsel %vm3906_vm4, %v2138_v9, %v2134_v57  ;;  %3336 = vmatprep.subr.mxu1 %v3410_v0  ;;  %3338 = vmatprep.mubr.msk.f32.mxu1 %vm3411_vm0, %v3410_v0  ;;  %vm3916_vm3 = vcmp.lt.s32.totalorder %v3525_v7, 109 }
 0x205   : > { %2176 = vmatpush1.msra.mxu0 %v2141_v12  ;;  %3337 = vmatpush3.msra.mxu1 %v2139_v10  ;;  %vm3917_vm4 = vmmov %vm3916_vm3 }
 0x206   : > { %2209 = vmatprep.mubr.f32.mxu0 %v3410_v0  ;;  %3339 = vmatmul.mubr.msk.f32.vlgmr.msra.gmra.mxu1 %vm273_vm2, %v3192_v4 }
 0x207   : > { %3224 = vmatprep.subr.msk.mxu0 %vm3704_vm14, %v1660_v38  ;;  %3341 = vmatprep.subr.mxu1 %v3410_v0  ;;  %v2439_v13 = vpop.permute.xlu0 %2438  ;;  %v2441_v14 = vpop.permute.xlu1 %2440  ;;  %v3197_v38 = vld [vmem:[%s3890_s1 + $0x88] sm:$0xff] }
 0x208   : > { %3222 = vmatmul.mubr.msk.f32.vlgmr.msra.gmra.mxu0 %vm273_vm2, %v3192_v4  ;;  %3342 = vmatpush3.msk.msra.mxu1 %vm3676_vm10, %v1661_v31  ;;  %v2442_v11 = vsel %vm3907_vm15, %v2439_v13, %v2441_v14  ;;  %v2444_v16 = vsel %vm3908_vm11, %v2441_v14, %v2437_v55  ;;  %v2443_v19 = vsel %vm3909_vm12, %v2437_v55, %v2439_v13  ;;  %vm3918_vm15 = vmmov %vm3916_vm3 }
 0x209   : > { %3225 = vmatpush1.msk.msra.mxu0 %vm3689_vm9, %v1659_v33  ;;  %3343 = vmatprep.mubr.msk.f32.mxu1 %vm3411_vm0, %v3410_v0 }
 0x20a   : > { %2478 = vmatprep.subr.mxu0 %v2442_v11  ;;  %3346 = vmatprep.subr.mxu1 %v3410_v0 }
 0x20b   : > { %2356 = vmatprep.mubr.f32.mxu0 %v3410_v0  ;;  %3344 = vmatmul.mubr.msk.f32.vlgmr.msra.gmra.mxu1 %vm273_vm2, %v3193_v15  ;;  %v2749_v17 = vpop.permute.xlu0 %2748  ;;  %v2593_v18 = vpop.permute.xlu1 %2592 }
 0x20c   : > { %3347 = vmatpush3.msra.mxu1 %v2444_v16  ;;  %3226 = vmatmul.mubr.msk.f32.vlgmr.msra.gmra.mxu0 %vm273_vm2, %v3193_v15  ;;  %v2600_v21 = vsel %vm3910_vm8, %v2597_v8, %v2593_v18 }
 0x20d   : > { %2479 = vmatpush1.msra.mxu0 %v2443_v19  ;;  %3348 = vmatprep.mubr.msk.f32.mxu1 %vm3411_vm0, %v3410_v0 }
 0x20e   : > { %3351 = vmatprep.subr.mxu1 %v3410_v0  ;;  %2512 = vmatprep.mubr.f32.mxu0 %v3410_v0 }
 0x20f   : > { %3349 = vmatmul.mubr.msk.f32.vlgmr.msra.gmra.mxu1 %vm273_vm2, %v3194_v20  ;;  %v2595_v22 = vpop.permute.xlu1 %2594  ;;  %v2751_v28 = vpop.permute.xlu0 %2750 }
 0x210   : > { %3352 = vmatpush3.msra.mxu1 %v2600_v21  ;;  %3229 = vmatmul.mubr.msk.f32.vlgmr.msra.gmra.mxu0 %vm273_vm2, %v3194_v20  ;;  %v2599_v23 = vsel %vm3911_vm6, %v2593_v18, %v2595_v22  ;;  %v2598_v24 = vsel %vm3912_vm7, %v2595_v22, %v2597_v8  ;;  %v2755_v33 = vsel %vm3915_vm1, %v2749_v17, %v2751_v28 }
 0x211   : > { %2634 = vmatprep.subr.mxu0 %v2598_v24  ;;  %3353 = vmatprep.mubr.msk.f32.mxu1 %vm3411_vm0, %v3410_v0 }
 0x212   : > { %2635 = vmatpush1.msra.mxu0 %v2599_v23  ;;  %2668 = vmatprep.mubr.f32.mxu0 %v3410_v0 }
 0x213   : > { %3354 = vmatmul.mubr.msk.f32.vlgmr.msra.gmra.mxu1 %vm273_vm2, %v3195_v25  ;;  %v2753_v29 = vpop.permute.xlu1 %2752  ;;  %3356 = vmatprep.subr.mxu1 %v3410_v0  ;;  %v2909_v34 = vpop.permute.xlu0 %2908 }
 0x214   : > { %3231 = vmatmul.mubr.msk.f32.vlgmr.msra.gmra.mxu0 %vm273_vm2, %v3195_v25  ;;  %v2756_v30 = vsel %vm3913_vm5, %v2753_v29, %v2749_v17  ;;  %v2754_v31 = vsel %vm3914_vm13, %v2751_v28, %v2753_v29  ;;  %3358 = vmatprep.mubr.msk.f32.mxu1 %vm3411_vm0, %v3410_v0 }
 0x215   : > { %2790 = vmatprep.subr.mxu0 %v2754_v31  ;;  %3357 = vmatpush3.msra.mxu1 %v2756_v30 }
 0x216   : > { %2791 = vmatpush1.msra.mxu0 %v2755_v33  ;;  %2824 = vmatprep.mubr.f32.mxu0 %v3410_v0 }
 0x217   : > { %3359 = vmatmul.mubr.msk.f32.vlgmr.msra.gmra.mxu1 %vm273_vm2, %v3196_v32  ;;  %v2907_v35 = vpop.permute.xlu1 %2906  ;;  %3361 = vmatprep.subr.mxu1 %v3410_v0 }
 0x218   : > { %3233 = vmatmul.mubr.msk.f32.vlgmr.msra.gmra.mxu0 %vm273_vm2, %v3196_v32  ;;  %v2910_v26 = vsel %vm3916_vm3, %v2907_v35, %v2909_v34  ;;  %3363 = vmatprep.mubr.msk.f32.mxu1 %vm3411_vm0, %v3410_v0  ;;  %vm3079_vm0 = vcmask 23568  }
 0x219   : > { %2946 = vmatprep.subr.mxu0 %v2910_v26  ;;  %2980 = vmatprep.mubr.f32.mxu0 %v3410_v0 }
 0x21b   : > { %v2905_v37 = vpop.permute.xlu1 %2904 }
 0x21c   : > { %v2911_v40 = vsel %vm3917_vm4, %v2905_v37, %v2907_v35  ;;  %v2912_v41 = vsel %vm3918_vm15, %v2909_v34, %v2905_v37 }
 0x21d   : > { %2947 = vmatpush1.msra.mxu0 %v2911_v40  ;;  %3362 = vmatpush3.msra.mxu1 %v2912_v41 }
 0x21e   : > { %3235 = vmatmul.mubr.msk.f32.vlgmr.msra.gmra.mxu0 %vm273_vm2, %v3197_v38  ;;  %3364 = vmatmul.mubr.msk.f32.vlgmr.msra.gmra.mxu1 %vm273_vm2, %v3197_v38 }
 0x220   : > { %v3062_v34 = vpop.permute.xlu0 %3061 }
 0x2ba   : > { %v1829_v42 = vpop.f32.mrf.mxu1 }
 0x2bb   : > { %v1758_v43 = vpop.f32.mrf.mxu0 }
 0x2bc   : > { %v3325_v0 = vpop.f32.mrf.mxu1 }
 0x2bd   : > { %v1760_v44 = vpop.f32.mrf.mxu0 }
 0x2be   : > { %v1973_v45 = vpop.f32.mrf.mxu1 }
 0x2bf   : > { %v1902_v46 = vpop.f32.mrf.mxu0  ;;  %v1974_v58 = vadd.f32 %v1973_v45, %v1829_v42 }
 0x2c0   : > { %v3330_v47 = vpop.f32.mrf.mxu1  ;;  %v1903_v63 = vadd.f32 %v1902_v46, %v1758_v43 }
 0x2c1   : > { %v1904_v48 = vpop.f32.mrf.mxu0 }
 0x2c2   : > { %v2126_v49 = vpop.f32.mrf.mxu1  ;;  %v1905_v8 = vadd.f32 %v1904_v48, %v1760_v44 }
 0x2c3   : > { %v2055_v50 = vpop.f32.mrf.mxu0  ;;  %v2132_v1 = vadd.f32 %v2126_v49, %v1974_v58 }
 0x2c4   : > { %v3335_v51 = vpop.f32.mrf.mxu1  ;;  %v2130_v9 = vadd.f32 %v2055_v50, %v1903_v63 }
 0x2c5   : > { %v2057_v52 = vpop.f32.mrf.mxu0 }
 0x2c6   : > { %v2282_v7 = vpop.f32.mrf.mxu1  ;;  %v2131_v12 = vadd.f32 %v2057_v52, %v1905_v8 }
 0x2c7   : > { %v2288_v13 = vadd.f32 %v2282_v7, %v2132_v1 }
 0x2c8   : > { %v2211_v53 = vpop.f32.mrf.mxu0  ;;  %v3340_v54 = vpop.f32.mrf.mxu1 }
 0x2c9   : > { %v2286_v14 = vadd.f32 %v2211_v53, %v2130_v9 }
 0x2ca   : > { %v2213_v55 = vpop.f32.mrf.mxu0 }
 0x2cb   : > { %v2429_v56 = vpop.f32.mrf.mxu1  ;;  %v2287_v16 = vadd.f32 %v2213_v55, %v2131_v12 }
 0x2cc   : > { %v2358_v57 = vpop.f32.mrf.mxu0  ;;  %v2435_v17 = vadd.f32 %v2429_v56, %v2288_v13 }
 0x2cd   : > { %v3345_v59 = vpop.f32.mrf.mxu1  ;;  %v2433_v18 = vadd.f32 %v2358_v57, %v2286_v14 }
 0x2ce   : > { %v2360_v60 = vpop.f32.mrf.mxu0 }
 0x2cf   : > { %v2585_v61 = vpop.f32.mrf.mxu1  ;;  %v2434_v21 = vadd.f32 %v2360_v60, %v2287_v16 }
 0x2d0   : > { %v2514_v62 = vpop.f32.mrf.mxu0  ;;  %v2591_v22 = vadd.f32 %v2585_v61, %v2435_v17  ;;  %v3088_v61 = vpop.permute.xlu0 %3087 }
 0x2d1   : > { %v3350_v2 = vpop.f32.mrf.mxu1  ;;  %v2589_v23 = vadd.f32 %v2514_v62, %v2433_v18 }
 0x2d2   : > { %v2516_v3 = vpop.f32.mrf.mxu0 }
 0x2d3   : > { %v2741_v4 = vpop.f32.mrf.mxu1  ;;  %v2590_v25 = vadd.f32 %v2516_v3, %v2434_v21  ;;  %v3423_v3 = vmov 4  }
 0x2d4   : > { %v2670_v10 = vpop.f32.mrf.mxu0  ;;  %v2747_v28 = vadd.f32 %v2741_v4, %v2591_v22  ;;  %3397 = vset.pattern.permute.xlu0 %v3423_v3 }
 0x2d5   : > { %v3355_v11 = vpop.f32.mrf.mxu1  ;;  %v2745_v29 = vadd.f32 %v2670_v10, %v2589_v23 }
 0x2d6   : > { %v2672_v15 = vpop.f32.mrf.mxu0 }
 0x2d7   : > { %v2897_v19 = vpop.f32.mrf.mxu1  ;;  %v2746_v31 = vadd.f32 %v2672_v15, %v2590_v25 }
 0x2d8   : > { %v2826_v20 = vpop.f32.mrf.mxu0  ;;  %v2903_v32 = vadd.f32 %v2897_v19, %v2747_v28 }
 0x2d9   : > { %v3360_v24 = vpop.f32.mrf.mxu1  ;;  %v2901_v33 = vadd.f32 %v2826_v20, %v2745_v29 }
 0x2da   : > { %v2828_v30 = vpop.f32.mrf.mxu0 }
 0x2db   : > { %v2902_v37 = vadd.f32 %v2828_v30, %v2746_v31 }
 0x2de   : > { %v2982_v35 = vpop.f32.mrf.mxu0  ;;  %v3053_v26 = vpop.f32.mrf.mxu1 }
 0x2df   : > { %v3057_v38 = vadd.f32 %v2982_v35, %v2901_v33  ;;  %v3059_v40 = vadd.f32 %v3053_v26, %v2903_v32 }
 0x2e0   : > { %v2984_v41 = vpop.f32.mrf.mxu0  ;;  %v3365_v42 = vpop.f32.mrf.mxu1 }
 0x2e1   : > { %v3064_v43 = vadd.f32 %v3062_v34, %v3057_v38  ;;  %v3066_v0 = vadd.f32 %v3062_v34, %v3059_v40  ;;  %v3058_v44 = vadd.f32 %v2984_v41, %v2902_v37 }
 0x2e3   : > { %v3067_v45 = vmax.f32 %v3064_v43, 0.0  ;;  %v3065_v46 = vadd.f32 %v3062_v34, %v3058_v44  ;;  %v3069_v47 = vmax.f32 %v3066_v0, 0.0 }
 0x2e5   : > { %v3068_v48 = vmax.f32 %v3065_v46, 0.0  ;;  %v3070_v49 = vsel %vm3689_vm9, %v3067_v45, 0.0  ;;  %v3072_v52 = vsel %vm3676_vm10, %v3069_v47, 0.0 }
 0x2e7   : > { %v3071_v50 = vsel %vm3704_vm14, %v3068_v48, 0.0 }
 0x2e8   : > { %v3073_v51 = vadd.f32 %v3071_v50, %v3070_v49 }
 0x2ea   : > { %v3074_v7 = vadd.f32 %v3073_v51, %v3072_v52 }
 0x2ec   : > { %3075 = vadd.xlane.f32.xlu1 %v3074_v7 }
 0x375   : > { %v3076_v53 = vpop.xlane.xlu1 %3075 }
 0x376   : > { %v3077_v54 = vmul.f32 0.00390625, %v3076_v53 }
 0x378   : > { %v3078_v55 = vmul.f32 %v3077_v54, %v3521_v5 }
 0x37a   : > { %v3080_v56 = vsel %vm3079_vm0, %v3078_v55, 0.0 }
 0x37b   : > { %v3081_v57 = vrot.slane %v3080_v56, 4 }
 0x37d   : > { %v3082_v58 = vadd.f32 %v3081_v57, %v3080_v56 }
 0x37f   : > { %v3083_v59 = vrot.slane %v3082_v58, 2 }
 0x381   : > { %v3084_v36 = vadd.f32 %v3083_v59, %v3082_v58 }
 0x383   : > { %v3085_v60 = vrot.slane %v3084_v36, 1 }
 0x385   : > { %v3086_v62 = vadd.f32 %v3085_v60, %v3084_v36 }
 0x387   : > { %v3090_v63 = vadd.f32 %v3088_v61, %v3086_v62 }
 0x389   : > { %v3091_v1 = vmax.f32 %v3090_v63, 0.0 }
 0x38b   : > { %v3095_v2 = vrot.slane %v3091_v1, %v3094_v27 }
 0x38d   : > { %3097 = vrot.lane.b32.xlu0 %v3095_v2, %s3422_s16 }
 0x3ff   : > { %v3098_v8 = vpop.permute.xlu0 %3097 }
 0x400   : > { %v3100_v9 = vmul.f32 %v3098_v8, %v3521_v5 }
 0x402   : > { %v3101_v4 = vadd.f32 %v3100_v9, %v3088_v61 }
 0x404   : > { %v3237_v10 = vmul.f32 -1.442695, %v3101_v4 }
 0x406   : > { %3398 = vpow2.f32 %v3237_v10 }
 0x413   : > { %v3399_v12 = vpop.eup %3398 }
 0x414   : > { %v3105_v13 = vadd.f32 1.0, %v3399_v12 }
 0x416   : > { %3400 = vrcp.f32 %v3105_v13 }
 0x423   : > { %v3401_v6 = vpop.eup %3400 }
 0x424   : > { %3110 = vperm.xlu0 %3397, %v3401_v6  }
 0x49f   : > { %v3111_v14 = vpop.permute.xlu0 %3110 }
 0x4a0   : > { %v3113_v11 = vmul.f32 %v3111_v14, %v3070_v49  ;;  %v3114_v15 = vmul.f32 %v3111_v14, %v3071_v50  ;;  %v3115_v16 = vmul.f32 %v3111_v14, %v3072_v52 }
 0x4a2   : > { %3116 = vst [vmem:[%s170_s27] sm:$0xff] %v3113_v11  ;;  %3117 = vst [vmem:[%s170_s27 + $0x8] sm:$0xff] %v3114_v15 }
 0x4a3   : > { %3118 = vst [vmem:[%s170_s27 + $0x10] sm:$0xff] %v3115_v16 }
 0x4a4 PF: > { %s13_s12 = sadd.s32 1, %s3408_s12  }
 0x4a5   : > { %p10_p4 = scmp.ge.s32.totalorder %s13_s12, 4  }
 0x4a7   :  { %12 = sbr.rel (!%p10_p4) target bundleno = 1 (0x1), region = 79 }

</bundles_post_ra>
